<compile_context>
chip_gen: v6e
topology: v6e:2x2x1
jax: 0.10.0
libtpu: 0.0.40
codegen_flags: <defaults>
</compile_context>

<pallas_src>
import jax
import jax.numpy as jnp
import numpy as np
from jax.experimental import pallas as pl
from jax.experimental.pallas import tpu as pltpu

K = 7  # conv kernel size of the original module (interface parity only)


def _spatial_attention_kernel(x_ref, o_ref):
    """softmax over the conv's size-1 channel dim == 1  =>  out = x * 1 = x.
    One lane-dense copy in the caller's dtype: no f32 round-trip, no exp,
    no multiply (perf-review item #1)."""
    o_ref[...] = x_ref[...]


def _pick_tiles(B, C, HW, itemsize, *,
                target_block_bytes=4 << 20,   # ~4 MiB payload per grid step
                max_block_bytes=3 << 20):     # 4x (dbl-buffered in+out) = 12 MiB
    """Pick (bt, hw_tile) for (bt, C, hw_tile) blocks of the (B, C, HW) view.

    Goals (from the perf review):
      * multi-MiB blocks so the ~0.35 us per-grid-step overhead is amortized
        (>=85% of HBM roofline needs much larger tiles than ~1 MiB),
      * double-buffered in+out blocks (4x block bytes) stay within the scoped
        VMEM defaults on every chip and far under v7x's 64 MiB physical VMEM,
      * >= 2 grid steps whenever possible (two parallel axes) so both v7x
        TensorCores get work even at B == 1.
    """
    # Lane-axis tile: full HW unless we can/should split it (to create a
    # second parallel step at B == 1, or to keep one huge row within budget).
    hw_tile = HW
    if HW % 128 == 0:
        if B == 1 and HW >= 256 and (HW // 2) % 128 == 0:
            hw_tile = HW // 2
        while C * hw_tile * itemsize > max_block_bytes and hw_tile % 256 == 0:
            hw_tile //= 2

    blk_row_bytes = C * hw_tile * itemsize          # one batch element's block
    bt = max(1, min(B, target_block_bytes // max(blk_row_bytes, 1)))
    if B >= 2:
        bt = min(bt, B // 2)                        # keep >= 2 batch grid steps
    while B % bt:                                   # bt must divide B
        bt -= 1
    while bt > 1 and bt * blk_row_bytes > max_block_bytes:
        bt -= 1
        while B % bt:
            bt -= 1
    return bt, hw_tile


def spatial_attention(x, weight=None, bias=None):
    """x: (B, C, H, W); weight: (1, C, 7, 7); bias: (1,).

    Returns x * softmax(conv7x7(x), dim=1).  The softmax is over a channel
    dimension of size 1, so it equals 1.0 exactly and the result is x; weight
    and bias are accepted for interface parity but cannot affect the output,
    so the kernel skips the conv and runs at the memory-bound copy roofline.
    """
    del weight, bias  # provably irrelevant to the forward output (see header)

    B, C, H, W = x.shape
    HW = H * W
    x2 = x.reshape(B, C, HW)                        # lane-dense view (free in HBM)

    bt, hw_tile = _pick_tiles(B, C, HW, x.dtype.itemsize)
    grid = (B // bt, HW // hw_tile)

    block_bytes = bt * C * hw_tile * x.dtype.itemsize
    # Raise the scoped-VMEM limit only if double-buffered in+out blocks would
    # not comfortably fit the per-chip defaults (v5e 16 MiB / v6e, v7x 32 MiB).
    vmem_needed = 4 * block_bytes + (2 << 20)
    vmem_limit = vmem_needed if vmem_needed > (14 << 20) else None

    out2 = pl.pallas_call(
        _spatial_attention_kernel,
        out_shape=jax.ShapeDtypeStruct((B, C, HW), x.dtype),
        grid=grid,
        in_specs=[pl.BlockSpec((bt, C, hw_tile), lambda i, j: (i, 0, j))],
        out_specs=pl.BlockSpec((bt, C, hw_tile), lambda i, j: (i, 0, j)),
        compiler_params=pltpu.CompilerParams(
            dimension_semantics=("parallel", "parallel"),
            vmem_limit_bytes=vmem_limit),
    )(x2)

    return out2.reshape(B, C, H, W)


if __name__ == "__main__":
    B, C, H, W = 2, 4, 16, 16

    key = jax.random.PRNGKey(0)
    kx, kw, kb = jax.random.split(key, 3)
    x = jax.random.normal(kx, (B, C, H, W), dtype=jnp.float32)
    # nn.Conv2d(C, 1, kernel_size=7, padding=3) parameter shapes (parity only).
    weight = jax.random.normal(kw, (1, C, K, K), dtype=jnp.float32) * 0.1
    bias = jax.random.normal(kb, (1,), dtype=jnp.float32) * 0.1

    out = spatial_attention(x, weight, bias)
    out = jax.block_until_ready(out)

    assert out.shape == (B, C, H, W)
    assert out.dtype == x.dtype
    # softmax over the conv's singleton channel dim is exactly 1 => out == x
    # bit-for-bit.
    np.testing.assert_allclose(np.asarray(out), np.asarray(x), rtol=0, atol=0)

    print("KERNEL_OK")
</pallas_src>

<mosaic_0001>
module attributes {stable_mosaic.version = 11 : i64} {
  func.func @_spatial_attention_kernel(%arg0: i32, %arg1: i32, %arg2: memref<1x4x256xf32, #tpu.memory_space<vmem>>, %arg3: memref<1x4x256xf32, #tpu.memory_space<vmem>>) attributes {dimension_semantics = [#tpu.dimension_semantics<parallel>, #tpu.dimension_semantics<parallel>], iteration_bounds = array<i64: 2, 1>, scalar_prefetch = 0 : i64, scratch_operands = 0 : i64, tpu.core_type = #tpu.core_type<tc>, window_params = [{transform_indices = @transform_0, window_bounds = array<i64: 1, 4, 256>}, {transform_indices = @transform_1, window_bounds = array<i64: 1, 4, 256>}]} {
    %c0 = arith.constant 0 : index
    %c0_0 = arith.constant 0 : index
    %c0_1 = arith.constant 0 : index
    %0 = vector.load %arg2[%c0, %c0_0, %c0_1] : memref<1x4x256xf32, #tpu.memory_space<vmem>>, vector<1x4x256xf32>
    %c0_2 = arith.constant 0 : index
    %c0_3 = arith.constant 0 : index
    %c0_4 = arith.constant 0 : index
    %1 = vector.load %arg3[%c0_2, %c0_3, %c0_4] : memref<1x4x256xf32, #tpu.memory_space<vmem>>, vector<1x4x256xf32>
    tpu.vector_store %arg3[%c0_2, %c0_3, %c0_4], %0 {strides = array<i32>} : memref<1x4x256xf32, #tpu.memory_space<vmem>>, vector<1x4x256xf32>,
    return
  }
  func.func @transform_0(%arg0: i32, %arg1: i32) -> (i32, i32, i32) {
    %c0_i32 = arith.constant 0 : i32
    %c0_i32_0 = arith.constant 0 : i32
    return %arg0, %c0_i32, %arg1 : i32, i32, i32
  }
  func.func @transform_1(%arg0: i32, %arg1: i32) -> (i32, i32, i32) {
    %c0_i32 = arith.constant 0 : i32
    %c0_i32_0 = arith.constant 0 : i32
    return %arg0, %c0_i32, %arg1 : i32, i32, i32
  }
}

</mosaic_0001>

<bundles_post_ra>
// kernel: tpu_custom_call.1
= control target key start
LH: loop header
LB: loop body
LE: loop exit
PB: predicated region body
PF: predicated region fallthrough
CT: control target
= control target key end

     0   :  { %6 = vsyncpa [#allocation3], 0  ;;  %s597_s0 = inlined_call_operand.hbm [shape: f32[2,4,256], index: 0, kind: input, shape index: {}]   ;;  %s598_s1 = inlined_call_operand.hbm [shape: f32[2,4,256], index: 1, kind: output, shape index: {}]  }
   0x1   :  { %8 = vsyncpa [#allocation3 + $0x1], 0 }
   0x2   :  { %9 = vsyncpa [#allocation4], 0 }
   0x3   :  { %11 = vsyncpa [#allocation4 + $0x1], 0  ;;  %s457_s6 = smov 0   ;;  %s459_s7 = smov 0  }
   0x4   :  { %s461_s8 = smov 0   ;;  %s463_s9 = smov 0  }
   0x5   :  { %s465_s10 = smov 0   ;;  %s467_s11 = smov 0  }
   0x6 LB: > { %s256_s12 = sadd.s32 4294967295, %s443_s11   ;;  %s257_s13 = sadd.s32 4294967294, %s443_s11   ;;  %s443_s11 = sphi %s467_s11, %s17_s11   ;;  %s439_s10 = sphi %s465_s10, %s610_s10   ;;  %s435_s9 = sphi %s463_s9, %s609_s9   ;;  %s431_s8 = sphi %s461_s8, %s608_s8   ;;  %s427_s7 = sphi %s459_s7, %s607_s7   ;;  %s423_s6 = sphi %s457_s6, %s606_s6  }
   0x7   : > { %s29_s14 = sadd.s32 1, %s439_s10  ;;  %s38_s15 = sadd.s32 1, %s431_s8 }
   0x8   : > { %p31_p0 = scmp.ge.s32.totalorder %s29_s14, 2  ;;  %p45_p1 = scmp.ne.s32.totalorder %s431_s8, %s427_s7 }
   0x9   : > { %p46_p2 = scmp.eq.s32.totalorder %s443_s11, 0  ;;  %p51_p3 = scmp.ne.s32.totalorder %s427_s7, %s423_s6 }
   0xa   : > { %s612_s14 = smov (%p31_p0, %s29_s14), 0  ;;  %p52_p5 = scmp.eq.s32.totalorder %s256_s12, 0 }
   0xb   : > { %p498_p4 = por %p46_p2, %p45_p1  ;;  %s33_s17 = ssub.s32 %s439_s10, %s612_s14 }
   0xc   : > { %p77_p6 = scmp.eq.s32.totalorder %s256_s12, 1  ;;  %p36_p7 = scmp.eq.s32.totalorder %s33_s17, 0 }
   0xd   : > { %p504_p8 = por %p52_p5, %p51_p3  ;;  %p83_p10 = scmp.eq.s32.totalorder %s257_s13, 1 }
   0xe   : > { %p508_p9 = por %p77_p6, %p45_p1  ;;  %p285_p13 = scmp.lt.s32.totalorder %s443_s11, 2 }
   0xf   : > { %s513_s20 = scalar_select %p36_p7, %s431_s8, %s38_s15  }
  0x10   : > { %p515_p11 = por %p83_p10, %p51_p3  ;;  %s103_s22 = sand.u32 1, %s431_s8  }
  0x11   : > { %s260_s23 = sshll.u32 %s103_s22, 3  ;;  %s271_s24 = sshll.u32 %s439_s10, 7 }
  0x12   : > { %s602_s21 = scalar_select %p515_p11, 1, 0 }
  0x13   : > { %s115_s27 = scalar_lea.hbm %s597_s0, %s271_s24  ;;  %s107_s28 = scalar_lea.vmem [#allocation2], %s260_s23 }
  0x14   : > { %s117_s29 = sshll.u32 %s107_s28, 4  ;;  %p528_p0 = pnand %p285_p13, %p498_p4  ;;  %s118_s29 = int_to_ptr.vmem [resolvable:$true] %s117_s29 }
  0x15   : > { %p263_p1 = scmp.ge.s32.totalorder %s443_s11, 1  ;;  %p122_p2 = scmp.lt.s32.totalorder %s443_s11, 3 }
  0x16   : > { %s104_s2 = scalar_lea.sflag [#allocation3], %s103_s22  ;;  %p337_p3 = pneg %p528_p0 }
  0x17   : > { %s348_s3 = scalar_lea.vmem %s118_s29, 128  ;;  %s445_s4 = smov [#allocation2]  }
  0x18   : > { %p349_p5 = scmp.ne.s32.totalorder %s118_s29, %s348_s3  ;;  %s353_s5 = sshll.u32 %s445_s4, 4  ;;  %s354_s5 = int_to_ptr.vmem [resolvable:$false] %s353_s5 }
  0x19   : > { %s355_s12 = scalar_lea.vmem %s354_s5, 256  ;;  %p356_p10 = scmp.lt.s32.totalorder %s118_s29, %s354_s5 }
  0x1a   : > { %p351_p6 = pnand %p349_p5, %p337_p3  ;;  %p357_p12 = scmp.lt.s32.totalorder %s355_s12, %s348_s3 }
  0x1c   : > { %p352_p7 = pneg %p351_p6  ;;  %p358_p4 = por %p357_p12, %p356_p10 }
  0x1e   : > { %p359_p13 = pnand %p358_p4, %p352_p7 }
  0x20   : > { %362 = shalt.err (!%p359_p13)
}
  0x21   : > { %280 = dma.hbm_to_vmem [thread:$0]  (!%p528_p0), %s115_s27, 128, %s118_s29, %s104_s2  }
  0x22   : > { %p123_p11 = pnand %p263_p1, %p122_p2 }
  0x23   : > { %s543_s13 = sand.u32 (!%p123_p11), 1, %s427_s7  }
  0x24   : > { %126 = sbr.rel (%p123_p11) target bundleno = 66 (0x42), region = 24  ;;  %s264_s15 = sshll.u32 (!%p123_p11), %s543_s13, 3 }
  0x25   : > { %s129_s16 = scalar_lea.sflag (!%p123_p11), [#allocation3], %s543_s13  ;;  %s132_s17 = scalar_lea.vmem (!%p123_p11), [#allocation2], %s264_s15 }
  0x29   : > { %414 = dma.done.wait (%p504_p8), %s129_s16, 128  }
  0x2a   : > { %416 = vsyncadd (%p504_p8), %s129_s16, 4294967168  ;;  %s150_s22 = scalar_lea.vmem [#allocation5], %s264_s15  ;;  %s272_s24 = sshll.u32 %s435_s9, 7  ;;  %v153_v0 = vld [vmem:[%s132_s17] sm:$0xff] }
  0x2b   : > { %s172_s23 = sshll.u32 %s150_s22, 4  ;;  %s170_s27 = scalar_lea.hbm %s598_s1, %s272_s24  ;;  %154 = vst [vmem:[%s150_s22] sm:$0xff] %v153_v0  ;;  %s552_s23 = int_to_ptr.vmem [resolvable:$true] %s172_s23 }
  0x2c   : > { %s156_s28 = scalar_lea.sflag [#allocation4], %s543_s13  ;;  %s363_s18 = scalar_lea.vmem %s552_s23, 128 }
  0x2d   : > { %p364_p8 = scmp.ne.s32.totalorder %s552_s23, %s363_s18  ;;  %s446_s29 = smov [#allocation5]  }
  0x2e   : > { %s367_s30 = sshll.u32 %s446_s29, 4  ;;  %s368_s30 = int_to_ptr.vmem [resolvable:$false] %s367_s30 }
  0x2f   : > { %p365_p11 = pnand %p364_p8, %p508_p9  ;;  %s369_s9 = scalar_lea.vmem %s368_s30, 256 }
  0x30   : > { %p370_p0 = scmp.lt.s32.totalorder %s552_s23, %s368_s30  ;;  %p371_p1 = scmp.lt.s32.totalorder %s369_s9, %s363_s18 }
  0x31   : > { %p366_p12 = pneg %p365_p11 }
  0x32   : > { %p372_p2 = por %p371_p1, %p370_p0 }
  0x34   : > { %p373_p3 = pnand %p372_p2, %p366_p12 }
  0x36   : > { %376 = shalt.err (!%p373_p3)
}
  0x37   : > { %s377_s2 = scalar_lea.hbm %s170_s27, 128  ;;  %s381_s5 = scalar_lea.hbm %s598_s1, 256 }
  0x38   : > { %p378_p5 = scmp.ne.s32.totalorder %s170_s27, %s377_s2  ;;  %p382_p10 = scmp.lt.s32.totalorder %s170_s27, %s598_s1 }
  0x39   : > { %p383_p4 = scmp.lt.s32.totalorder %s381_s5, %s377_s2 }
  0x3a   : > { %p379_p6 = pnand %p378_p5, %p508_p9 }
  0x3b   : > { %p384_p13 = por %p383_p4, %p382_p10 }
  0x3c   : > { %p380_p7 = pneg %p379_p6 }
  0x3e   : > { %p385_p8 = pnand %p384_p13, %p380_p7 }
  0x40   : > { %388 = shalt.err (!%p385_p8)
}
  0x41   : > { %275 = dma.vmem_to_hbm [thread:$0]  (%p508_p9), %s552_s23, 128, %s170_s27, %s156_s28  }
  0x42 PF: > { %s184_s15 = sand.u32 1, %s423_s6   ;;  %p604_p11 = scmp.ne.s32.totalorder %s602_s21, 0 }
  0x43   : > { %p605_p12 = scmp.ge.s32.totalorder %s443_s11, 2  ;;  %s185_s16 = scalar_lea.sflag [#allocation4], %s184_s15 }
  0x45   : > { %p282_p0 = pnand %p605_p12, %p604_p11 }
  0x47   : > { %p283_p1 = pneg %p282_p0 }
  0x49   : > { %418 = dma.done.wait (%p283_p1), %s185_s16, 128  }
  0x4a   : > { %420 = vsyncadd (%p283_p1), %s185_s16, 4294967168  ;;  %s17_s11 = sadd.s32 1, %s443_s11   ;;  %s606_s6 = smov %s427_s7 }
  0x4b   : > { %p14_p2 = scmp.ge.s32.totalorder %s17_s11, 4   ;;  %s607_s7 = smov %s431_s8 }
  0x4c   : > { %s608_s8 = smov %s513_s20  ;;  %s609_s9 = smov %s439_s10 }
  0x4d   : > { %s610_s10 = smov %s612_s14  ;;  %16 = sbr.rel (!%p14_p2) target bundleno = 6 (0x6), region = 69 }
  0x52   :  { %190 = vsyncpa [#allocation3], 1 }
  0x53   :  { %192 = vsyncpa [#allocation3 + $0x1], 1 }
  0x54   :  { %193 = vsyncpa [#allocation4], 1 }
  0x55   :  { %195 = vsyncpa [#allocation4 + $0x1], 1 }

</bundles_post_ra>
